<compile_context>
chip_gen: v7x
topology: tpu7x:2x2x1
jax: 0.10.0
libtpu: 0.0.40
codegen_flags: <defaults>
</compile_context>

<pallas_src>
import jax
import jax.numpy as jnp
from jax.experimental import pallas as pl
from jax.experimental.pallas import tpu as pltpu

FEATURE_DIM = 768   # dinov2_vitb14 -> feature_dim = 768
NUM_LABELS = 14
LANE = 128          # TPU lane width; label axis padded to this for dense stores
_MIN_TILE = 16      # sublane granularity; also satisfies bf16 (16,128) tiling


def _round_up(x, m):
    return ((x + m - 1) // m) * m


def _probe_kernel(x_ref, w_ref, b_ref, o_ref):
    """logits_tile = x_tile @ W + b  — single MXU dot, no accumulator/branches."""
    x = x_ref[...].astype(w_ref.dtype)      # no-op for f32 W; bf16 W -> bf16 operands
    acc = jnp.dot(x, w_ref[...], preferred_element_type=jnp.float32)
    o_ref[...] = (acc + b_ref[...]).astype(o_ref.dtype)


def pad_probe_params(w, b, *, bf16_matmul=False):
    """Pad (D, N) weight / (N,) bias to 128 lanes. Call once; reuse per apply.

    bf16_matmul=True casts W to bf16 (f32 accumulation in-kernel): recommended
    on v5e where f32 MXU passes can become the binding resource; accuracy-
    dependent (linear-probe logits in bf16 are normally fine).
    """
    D, N = w.shape
    n_pad = pl.cdiv(N, LANE) * LANE
    w_dt = jnp.bfloat16 if bf16_matmul else w.dtype
    w_p = jnp.zeros((D, n_pad), w_dt).at[:, :N].set(w.astype(w_dt))
    b_p = jnp.zeros((1, n_pad), jnp.float32).at[0, :N].set(b.astype(jnp.float32))
    return w_p, b_p, N


def linear_probe_head(features, w_p, b_p, num_labels, *, tb=1024):
    """logits = features @ W + b on pre-padded params.

    Weights/bias stay fully resident; the grid tiles over the batch only,
    every step independent ("parallel"), no pre-padding of the batch.
    """
    B, D = features.shape
    Dw, n_pad = w_p.shape
    assert D == Dw, (D, Dw)

    # Batch tiling: >= 2 grid steps when B is large enough (v7x dual-TC),
    # capped at tb (VMEM: 2*tb*D*4 + 2*tb*128*4 + W+b; tb=1024 ~ 8 MiB,
    # fits default scoped VMEM on v5e/v6e/v7x).  Small B -> one full block.
    if B >= 2 * _MIN_TILE:
        tb_eff = min(tb, _round_up(pl.cdiv(B, 2), _MIN_TILE))
    else:
        tb_eff = B
    grid = pl.cdiv(B, tb_eff)

    out = pl.pallas_call(
        _probe_kernel,
        out_shape=jax.ShapeDtypeStruct((B, n_pad), features.dtype),
        grid_spec=pltpu.PrefetchScalarGridSpec(
            num_scalar_prefetch=0,
            grid=(grid,),
            in_specs=[
                pl.BlockSpec((tb_eff, D), lambda i: (i, 0)),   # features tile
                pl.BlockSpec((D, n_pad), lambda i: (0, 0)),    # W (resident)
                pl.BlockSpec((1, n_pad), lambda i: (0, 0)),    # bias (resident)
            ],
            out_specs=pl.BlockSpec((tb_eff, n_pad), lambda i: (i, 0)),
        ),
        compiler_params=pltpu.CompilerParams(
            dimension_semantics=("parallel",),  # batch steps independent
        ),
    )(features, w_p, b_p)

    return out[:, :num_labels]


if __name__ == "__main__":
    key = jax.random.PRNGKey(0)
    k_feat, k_feat2, k_w, k_b = jax.random.split(key, 4)

    # Deterministic classifier params (nn.Linear(768, 14)-style init).
    bound = 1.0 / (FEATURE_DIM ** 0.5)
    w = jax.random.uniform(
        k_w, (FEATURE_DIM, NUM_LABELS), minval=-bound, maxval=bound,
        dtype=jnp.float32)
    b = jax.random.uniform(
        k_b, (NUM_LABELS,), minval=-bound, maxval=bound, dtype=jnp.float32)

    # Pad/prepare params once (hoisted out of the per-call apply path).
    w_f32, b_f32, _ = pad_probe_params(w, b, bf16_matmul=False)
    w_bf16, b_bf16, _ = pad_probe_params(w, b, bf16_matmul=True)

    # Backbone output features (stand-in for DINOv2Wrapper(x)); the backbone
    # itself is frozen/pretrained and not reproduced here.
    batch = 2
    features = jax.random.normal(k_feat, (batch, FEATURE_DIM), dtype=jnp.float32)

    # --- f32 path, tiny batch (single full block) ---
    logits = jax.block_until_ready(
        linear_probe_head(features, w_f32, b_f32, NUM_LABELS))
    ref = features @ w + b[None, :]
    assert logits.shape == (batch, NUM_LABELS)
    assert jnp.allclose(logits, ref, atol=1e-4, rtol=1e-4), (
        float(jnp.max(jnp.abs(logits - ref))))

    # --- f32 path, ragged batch: exercises >=2 grid steps + masked edge block
    #     (no whole-array pre-pad) ---
    batch2 = 40
    features2 = jax.random.normal(k_feat2, (batch2, FEATURE_DIM),
                                  dtype=jnp.float32)
    logits2 = jax.block_until_ready(
        linear_probe_head(features2, w_f32, b_f32, NUM_LABELS))
    ref2 = features2 @ w + b[None, :]
    assert logits2.shape == (batch2, NUM_LABELS)
    assert jnp.allclose(logits2, ref2, atol=1e-4, rtol=1e-4), (
        float(jnp.max(jnp.abs(logits2 - ref2))))

    # --- bf16-operand path (f32 accumulation), accuracy-dependent ---
    logits_bf = jax.block_until_ready(
        linear_probe_head(features2, w_bf16, b_bf16, NUM_LABELS))
    assert logits_bf.shape == (batch2, NUM_LABELS)
    assert jnp.allclose(logits_bf, ref2, atol=5e-2, rtol=5e-2), (
        float(jnp.max(jnp.abs(logits_bf - ref2))))

    print("KERNEL_OK")
</pallas_src>

<mosaic_0001>
module attributes {stable_mosaic.version = 11 : i64} {
  func.func @_probe_kernel(%arg0: i32, %arg1: memref<2x768xf32, #tpu.memory_space<vmem>>, %arg2: memref<768x128xf32, #tpu.memory_space<vmem>>, %arg3: memref<1x128xf32, #tpu.memory_space<vmem>>, %arg4: memref<2x128xf32, #tpu.memory_space<vmem>>) attributes {dimension_semantics = [#tpu.dimension_semantics<parallel>], iteration_bounds = array<i64: 1>, scalar_prefetch = 0 : i64, scratch_operands = 0 : i64, tpu.core_type = #tpu.core_type<tc>, window_params = [{transform_indices = @transform_0, window_bounds = array<i64: 2, 768>}, {pipeline_mode = #tpu.pipeline_mode<synchronous>, transform_indices = @transform_1, window_bounds = array<i64: 768, 128>}, {pipeline_mode = #tpu.pipeline_mode<synchronous>, transform_indices = @transform_2, window_bounds = array<i64: 1, 128>}, {transform_indices = @transform_3, window_bounds = array<i64: 2, 128>}]} {
    %c0 = arith.constant 0 : index
    %c0_0 = arith.constant 0 : index
    %0 = vector.load %arg1[%c0, %c0_0] : memref<2x768xf32, #tpu.memory_space<vmem>>, vector<2x768xf32>
    %c0_1 = arith.constant 0 : index
    %c0_2 = arith.constant 0 : index
    %1 = vector.load %arg2[%c0_1, %c0_2] : memref<768x128xf32, #tpu.memory_space<vmem>>, vector<768x128xf32>
    %cst = arith.constant dense<0.000000e+00> : vector<2x128xf32>
    %2 = tpu.matmul %0, %1, %cst {dimension_numbers = #tpu.dot_dimension_numbers<[1], [0], [0], [1], [0, 0, 1, 1], [], []>} : vector<2x768xf32>, vector<768x128xf32>, vector<2x128xf32> -> vector<2x128xf32>
    %c0_3 = arith.constant 0 : index
    %c0_4 = arith.constant 0 : index
    %3 = vector.load %arg3[%c0_3, %c0_4] : memref<1x128xf32, #tpu.memory_space<vmem>>, vector<1x128xf32>
    %4 = vector.broadcast %3 : vector<1x128xf32> to vector<2x128xf32>
    %5 = arith.addf %2, %4 : vector<2x128xf32>
    %c0_5 = arith.constant 0 : index
    %c0_6 = arith.constant 0 : index
    %6 = vector.load %arg4[%c0_5, %c0_6] : memref<2x128xf32, #tpu.memory_space<vmem>>, vector<2x128xf32>
    tpu.vector_store %arg4[%c0_5, %c0_6], %5 {strides = array<i32>} : memref<2x128xf32, #tpu.memory_space<vmem>>, vector<2x128xf32>,
    return
  }
  func.func @transform_0(%arg0: i32) -> (i32, i32) {
    %c0_i32 = arith.constant 0 : i32
    %c0_i32_0 = arith.constant 0 : i32
    return %arg0, %c0_i32 : i32, i32
  }
  func.func @transform_1(%arg0: i32) -> (i32, i32) {
    %c0_i32 = arith.constant 0 : i32
    %c0_i32_0 = arith.constant 0 : i32
    %c0_i32_1 = arith.constant 0 : i32
    return %c0_i32, %c0_i32_0 : i32, i32
  }
  func.func @transform_2(%arg0: i32) -> (i32, i32) {
    %c0_i32 = arith.constant 0 : i32
    %c0_i32_0 = arith.constant 0 : i32
    %c0_i32_1 = arith.constant 0 : i32
    return %c0_i32, %c0_i32_0 : i32, i32
  }
  func.func @transform_3(%arg0: i32) -> (i32, i32) {
    %c0_i32 = arith.constant 0 : i32
    %c0_i32_0 = arith.constant 0 : i32
    return %arg0, %c0_i32 : i32, i32
  }
}

</mosaic_0001>

<bundles_post_ra>
// kernel: tpu_custom_call.1
= control target key start
LH: loop header
LB: loop body
LE: loop exit
PB: predicated region body
PF: predicated region fallthrough
CT: control target
= control target key end

     0   :  { %8 = vsyncpa [#allocation3], 0  ;;  %s760_s0 = inlined_call_operand.hbm [shape: f32[2,768], index: 0, kind: input, shape index: {}]   ;;  %s761_s1 = inlined_call_operand.hbm [shape: f32[768,128], index: 1, kind: input, shape index: {}]   ;;  %s762_s2 = inlined_call_operand.vmem [shape: f32[1,128], index: 2, kind: input, shape index: {}]   ;;  %s763_s3 = inlined_call_operand.hbm [shape: f32[2,128], index: 3, kind: output, shape index: {}]  }
   0x1   :  { %9 = vsyncpa [#allocation6], 0 }
   0x2   :  { %10 = vsyncpa [#allocation4], 0  ;;  %s688_s12 = smov [#allocation2]   ;;  %s689_s14 = smov [#allocation5]  }
   0x3   :  { %s17_s13 = sshll.u32 %s688_s12, 4  ;;  %s26_s15 = sshll.u32 %s689_s14, 4  ;;  %s18_s13 = int_to_ptr.vmem [resolvable:$true] %s17_s13  ;;  %s714_s15 = int_to_ptr.vmem [resolvable:$true] %s26_s15 }
   0x4   :  { %s616_s18 = scalar_lea.hbm %s760_s0, 192 }
   0x5   :  { %p617_p0 = scmp.ne.s32.totalorder %s760_s0, %s616_s18  ;;  %p620_p1 = scmp.lt.u32.totalorder %s616_s18, %s760_s0 }
   0x7   :  { %p622_p2 = pnand %p620_p1, %p617_p0 }
   0x9   :  { %625 = shalt.err (!%p622_p2)
}
   0xa   :  { %s626_s23 = scalar_lea.vmem %s18_s13, 192  ;;  %p631_p4 = scmp.lt.s32.totalorder %s18_s13, %s18_s13 }
   0xb   :  { %p627_p3 = scmp.ne.s32.totalorder %s18_s13, %s626_s23  ;;  %p632_p5 = scmp.lt.s32.totalorder %s626_s23, %s626_s23 }
   0xd   :  { %p633_p6 = por %p632_p5, %p631_p4 }
   0xf   :  { %p634_p7 = pnand %p633_p6, %p627_p3 }
  0x11   :  { %637 = shalt.err (!%p634_p7)
}
  0x12   :  { %20 = dma.hbm_to_vmem [thread:$0]  %s760_s0, 192, %s18_s13, [#allocation3]  }
  0x13   :  { %s638_s28 = scalar_lea.hbm %s761_s1, 12288 }
  0x14   :  { %p639_p8 = scmp.ne.s32.totalorder %s761_s1, %s638_s28  ;;  %p642_p9 = scmp.lt.u32.totalorder %s638_s28, %s761_s1 }
  0x16   :  { %p644_p10 = pnand %p642_p9, %p639_p8 }
  0x18   :  { %647 = shalt.err (!%p644_p10)
}
  0x19   :  { %s648_s6 = scalar_lea.vmem %s714_s15, 12288  ;;  %p653_p12 = scmp.lt.s32.totalorder %s714_s15, %s714_s15 }
  0x1a   :  { %p649_p11 = scmp.ne.s32.totalorder %s714_s15, %s648_s6  ;;  %p654_p13 = scmp.lt.s32.totalorder %s648_s6, %s648_s6 }
  0x1c   :  { %p655_p0 = por %p654_p13, %p653_p12 }
  0x1e   :  { %p656_p1 = pnand %p655_p0, %p649_p11 }
  0x20   :  { %659 = shalt.err (!%p656_p1)
}
  0x21   :  { %s690_s0 = smov 128   ;;  %s691_s7 = smov 8  }
  0x22   :  { %32 = dma.hbm_to_vmem [thread:$0]  %s761_s1, 12288, %s714_s15, [#allocation6], %s690_s0, %s690_s0, %s691_s7  }
  0x23   :  { %682 = dma.done.wait [#allocation3], 192  }
  0x24   :  { %683 = vsyncadd [#allocation3], 4294967104 }
  0x25   :  { %684 = dma.done.wait [#allocation6], 12288  }
  0x26   :  { %685 = vsyncadd [#allocation6], 4294955008  ;;  %v59_v0 = vld [vmem:[#allocation5 + $0x80] sm:$0xff]  ;;  %v60_v1 = vld [vmem:[#allocation5 + $0x88] sm:$0xff]  ;;  %v692_v43 = vmov 1983009808   ;;  %v152_v45 = vlaneseq }
  0x27   :  { %v43_v2 = vld [vmem:[#allocation5] sm:$0xff]  ;;  %v513_v3 = vpack.c.bf16 %v60_v1, %v59_v0  ;;  %v44_v4 = vld [vmem:[#allocation5 + $0x8] sm:$0xff]  ;;  %v61_v11 = vld [vmem:[#allocation5 + $0x90] sm:$0xff]  ;;  %v150_v44 = vunpack.c.l.s4 %v692_v43  ;;  %s693_s11 = smov [#allocation7]  }
  0x28   :  { %v91_v5 = vld [vmem:[#allocation5 + $0x180] sm:$0xff]  ;;  %v92_v6 = vld [vmem:[#allocation5 + $0x188] sm:$0xff]  ;;  %v515_v7 = vpack.c.bf16 %v44_v4, %v43_v2  ;;  %v62_v13 = vld [vmem:[#allocation5 + $0x98] sm:$0xff]  ;;  %v153_v60 = vshrl.u32 %v152_v45, 7  ;;  %s396_s12 = sshll.u32 %s693_s11, 4  ;;  %s397_s12 = int_to_ptr.vmem [resolvable:$true] %s396_s12 }
  0x29   :  { %v545_v8 = vpack.c.bf16 %v92_v6, %v91_v5  ;;  %v75_v9 = vld [vmem:[#allocation5 + $0x100] sm:$0xff]  ;;  %v76_v10 = vld [vmem:[#allocation5 + $0x108] sm:$0xff]  ;;  %514 = vmatprep.subr.bf16.mxu0 %v513_v3  ;;  %v45_v14 = vld [vmem:[#allocation5 + $0x10] sm:$0xff]  ;;  %v517_v16 = vpack.c.bf16 %v62_v13, %v61_v11  ;;  %v151_v59 = vunpack.c.0.s8 %v150_v44  ;;  %s660_s13 = scalar_lea.vmem %s397_s12, 32  ;;  %p665_p3 = scmp.lt.s32.totalorder %s397_s12, %s397_s12 }
  0x2a   :  { %v547_v12 = vpack.c.bf16 %v76_v10, %v75_v9  ;;  %v46_v15 = vld [vmem:[#allocation5 + $0x18] sm:$0xff]  ;;  %516 = vmatpush3.bf16.msra.mxu0 %v515_v7  ;;  %v93_v18 = vld [vmem:[#allocation5 + $0x190] sm:$0xff]  ;;  %v63_v23 = vld [vmem:[#allocation5 + $0xa0] sm:$0xff]  ;;  %p661_p2 = scmp.ne.s32.totalorder %s397_s12, %s660_s13  ;;  %p666_p4 = scmp.lt.s32.totalorder %s660_s13, %s660_s13 }
  0x2b   :  { %546 = vmatprep.subr.bf16.mxu1 %v545_v8  ;;  %v519_v17 = vpack.c.bf16 %v46_v15, %v45_v14  ;;  %v94_v19 = vld [vmem:[#allocation5 + $0x198] sm:$0xff]  ;;  %v77_v20 = vld [vmem:[#allocation5 + $0x110] sm:$0xff]  ;;  %v64_v24 = vld [vmem:[#allocation5 + $0xa8] sm:$0xff]  ;;  %518 = vmatprep.subr.bf16.mxu0 %v517_v16  ;;  %v154_v10 = vsub.s32 %v151_v59, %v153_v60 }
  0x2c   :  { %548 = vmatpush3.bf16.msra.mxu1 %v547_v12  ;;  %v549_v21 = vpack.c.bf16 %v94_v19, %v93_v18  ;;  %v78_v22 = vld [vmem:[#allocation5 + $0x118] sm:$0xff]  ;;  %v521_v26 = vpack.c.bf16 %v64_v24, %v63_v23  ;;  %v47_v27 = vld [vmem:[#allocation5 + $0x20] sm:$0xff]  ;;  %v48_v28 = vld [vmem:[#allocation5 + $0x28] sm:$0xff]  ;;  %p667_p5 = por %p666_p4, %p665_p3 }
  0x2d   :  { %v551_v25 = vpack.c.bf16 %v78_v22, %v77_v20  ;;  %v95_v29 = vld [vmem:[#allocation5 + $0x1a0] sm:$0xff]  ;;  %v96_v30 = vld [vmem:[#allocation5 + $0x1a8] sm:$0xff]  ;;  %v523_v33 = vpack.c.bf16 %v48_v28, %v47_v27  ;;  %v65_v35 = vld [vmem:[#allocation5 + $0xb0] sm:$0xff] }
  0x2e   :  { %550 = vmatprep.subr.bf16.mxu1 %v549_v21  ;;  %v79_v31 = vld [vmem:[#allocation5 + $0x120] sm:$0xff]  ;;  %v80_v32 = vld [vmem:[#allocation5 + $0x128] sm:$0xff]  ;;  %520 = vmatpush3.bf16.msra.mxu0 %v519_v17  ;;  %v553_v34 = vpack.c.bf16 %v96_v30, %v95_v29  ;;  %v66_v36 = vld [vmem:[#allocation5 + $0xb8] sm:$0xff]  ;;  %p668_p6 = pnand %p667_p5, %p661_p2 }
  0x2f   :  { %v49_v37 = vld [vmem:[#allocation5 + $0x30] sm:$0xff]  ;;  %522 = vmatprep.subr.bf16.mxu0 %v521_v26  ;;  %v555_v38 = vpack.c.bf16 %v80_v32, %v79_v31  ;;  %v525_v39 = vpack.c.bf16 %v66_v36, %v65_v35  ;;  %v50_v40 = vld [vmem:[#allocation5 + $0x38] sm:$0xff]  ;;  %v67_v49 = vld [vmem:[#allocation5 + $0xc0] sm:$0xff] }
  0x30   :  { %552 = vmatpush3.bf16.msra.mxu1 %v551_v25  ;;  %v97_v41 = vld [vmem:[#allocation5 + $0x1b0] sm:$0xff]  ;;  %v98_v42 = vld [vmem:[#allocation5 + $0x1b8] sm:$0xff]  ;;  %v68_v50 = vld [vmem:[#allocation5 + $0xc8] sm:$0xff]  ;;  %v527_v51 = vpack.c.bf16 %v50_v40, %v49_v37 }
  0x31   :  { %554 = vmatprep.subr.bf16.mxu1 %v553_v34  ;;  %v557_v46 = vpack.c.bf16 %v98_v42, %v97_v41  ;;  %v81_v47 = vld [vmem:[#allocation5 + $0x130] sm:$0xff]  ;;  %v82_v48 = vld [vmem:[#allocation5 + $0x138] sm:$0xff]  ;;  %v99_v52 = vld [vmem:[#allocation5 + $0x1c0] sm:$0xff]  ;;  %v529_v55 = vpack.c.bf16 %v68_v50, %v67_v49 }
  0x32   :  { %524 = vmatpush3.bf16.msra.mxu0 %v523_v33  ;;  %v100_v53 = vld [vmem:[#allocation5 + $0x1c8] sm:$0xff]  ;;  %v559_v54 = vpack.c.bf16 %v82_v48, %v81_v47  ;;  %v51_v56 = vld [vmem:[#allocation5 + $0x40] sm:$0xff]  ;;  %v69_v63 = vld [vmem:[#allocation5 + $0xd0] sm:$0xff] }
  0x33   :  { %526 = vmatprep.subr.bf16.mxu0 %v525_v39  ;;  %v52_v57 = vld [vmem:[#allocation5 + $0x48] sm:$0xff]  ;;  %v83_v58 = vld [vmem:[#allocation5 + $0x140] sm:$0xff]  ;;  %v561_v61 = vpack.c.bf16 %v100_v53, %v99_v52  ;;  %v70_v0 = vld [vmem:[#allocation5 + $0xd8] sm:$0xff] }
  0x34   :  { %556 = vmatpush3.bf16.msra.mxu1 %v555_v38  ;;  %v84_v62 = vld [vmem:[#allocation5 + $0x148] sm:$0xff]  ;;  %v101_v1 = vld [vmem:[#allocation5 + $0x1d0] sm:$0xff]  ;;  %v102_v2 = vld [vmem:[#allocation5 + $0x1d8] sm:$0xff]  ;;  %v531_v3 = vpack.c.bf16 %v52_v57, %v51_v56  ;;  %v533_v6 = vpack.c.bf16 %v70_v0, %v69_v63 }
  0x35   :  { %558 = vmatprep.subr.bf16.mxu1 %v557_v46  ;;  %v53_v4 = vld [vmem:[#allocation5 + $0x50] sm:$0xff]  ;;  %v563_v5 = vpack.c.bf16 %v84_v62, %v83_v58  ;;  %v54_v7 = vld [vmem:[#allocation5 + $0x58] sm:$0xff]  ;;  %v565_v11 = vpack.c.bf16 %v102_v2, %v101_v1  ;;  %v71_v12 = vld [vmem:[#allocation5 + $0xe0] sm:$0xff] }
  0x36   :  { %528 = vmatpush3.bf16.msra.mxu0 %v527_v51  ;;  %v85_v8 = vld [vmem:[#allocation5 + $0x150] sm:$0xff]  ;;  %v86_v9 = vld [vmem:[#allocation5 + $0x158] sm:$0xff]  ;;  %v72_v13 = vld [vmem:[#allocation5 + $0xe8] sm:$0xff]  ;;  %v535_v16 = vpack.c.bf16 %v54_v7, %v53_v4 }
  0x37   :  { %530 = vmatprep.subr.bf16.mxu0 %v529_v55  ;;  %v103_v14 = vld [vmem:[#allocation5 + $0x1e0] sm:$0xff]  ;;  %v104_v15 = vld [vmem:[#allocation5 + $0x1e8] sm:$0xff]  ;;  %v567_v17 = vpack.c.bf16 %v86_v9, %v85_v8  ;;  %v41_v18 = vld [vmem:[#allocation2] sm:$0xff]  ;;  %v537_v19 = vpack.c.bf16 %v72_v13, %v71_v12 }
  0x38   :  { %560 = vmatpush3.bf16.msra.mxu1 %v559_v54  ;;  %v55_v20 = vld [vmem:[#allocation5 + $0x60] sm:$0xff]  ;;  %v56_v21 = vld [vmem:[#allocation5 + $0x68] sm:$0xff]  ;;  %v155_v23 = vrot.slane %v41_v18, %v154_v10  ;;  %v148_v24 = vcombine.high %v41_v18, %v41_v18  ;;  %v569_v25 = vpack.c.bf16 %v104_v15, %v103_v14  ;;  %v73_v27 = vld [vmem:[#allocation5 + $0xf0] sm:$0xff] }
  0x39   :  { %562 = vmatprep.subr.bf16.mxu1 %v561_v61  ;;  %v87_v22 = vld [vmem:[#allocation5 + $0x160] sm:$0xff]  ;;  %v88_v26 = vld [vmem:[#allocation5 + $0x168] sm:$0xff]  ;;  %v74_v28 = vld [vmem:[#allocation5 + $0xf8] sm:$0xff]  ;;  %v539_v33 = vpack.c.bf16 %v56_v21, %v55_v20 }
  0x3a   :  { %532 = vmatpush3.bf16.msra.mxu0 %v531_v3  ;;  %v105_v29 = vld [vmem:[#allocation5 + $0x1f0] sm:$0xff]  ;;  %v106_v30 = vld [vmem:[#allocation5 + $0x1f8] sm:$0xff]  ;;  %v163_v31 = vcombine.high %v155_v23, %v155_v23  ;;  %v162_v32 = vrot.slane %v148_v24, %v154_v10  ;;  %v571_v34 = vpack.c.bf16 %v88_v26, %v87_v22  ;;  %v541_v35 = vpack.c.bf16 %v74_v28, %v73_v27  ;;  %v123_v42 = vld [vmem:[#allocation5 + $0x280] sm:$0xff] }
  0x3b   :  { %534 = vmatprep.subr.bf16.mxu0 %v533_v6  ;;  %v57_v36 = vld [vmem:[#allocation5 + $0x70] sm:$0xff]  ;;  %v58_v37 = vld [vmem:[#allocation5 + $0x78] sm:$0xff]  ;;  %v573_v40 = vpack.c.bf16 %v106_v30, %v105_v29  ;;  %v124_v43 = vld [vmem:[#allocation5 + $0x288] sm:$0xff] }
  0x3c   :  { %564 = vmatpush3.bf16.msra.mxu1 %v563_v5  ;;  %v89_v38 = vld [vmem:[#allocation5 + $0x170] sm:$0xff]  ;;  %v164_v39 = vcombine.high %v162_v32, %v162_v32  ;;  %243 = vmatprep.mubr.f32.mxu0 %v163_v31  ;;  %v90_v41 = vld [vmem:[#allocation5 + $0x178] sm:$0xff]  ;;  %v543_v44 = vpack.c.bf16 %v58_v37, %v57_v36  ;;  %v577_v46 = vpack.c.bf16 %v124_v43, %v123_v42  ;;  %v107_v47 = vld [vmem:[#allocation5 + $0x200] sm:$0xff] }
  0x3d   :  { %566 = vmatprep.subr.bf16.mxu1 %v565_v11  ;;  %v575_v45 = vpack.c.bf16 %v90_v41, %v89_v38  ;;  %v108_v48 = vld [vmem:[#allocation5 + $0x208] sm:$0xff]  ;;  %v125_v49 = vld [vmem:[#allocation5 + $0x290] sm:$0xff]  ;;  %v126_v50 = vld [vmem:[#allocation5 + $0x298] sm:$0xff] }
  0x3e   :  { %536 = vmatpush3.bf16.msra.mxu0 %v535_v16  ;;  %313 = vmatprep.mubr.f32.mxu1 %v164_v39  ;;  %v579_v51 = vpack.c.bf16 %v108_v48, %v107_v47  ;;  %v407_v52 = vld.sshfl [vmem:[#allocation2 + $0x8] sm:$0x33 pattern:$0x76325410]  ;;  %v581_v53 = vpack.c.bf16 %v126_v50, %v125_v49  ;;  %v109_v54 = vld [vmem:[#allocation5 + $0x210] sm:$0xff]  ;;  %v127_v57 = vld [vmem:[#allocation5 + $0x2a0] sm:$0xff] }
  0x3f   :  { %538 = vmatprep.subr.bf16.mxu0 %v537_v19  ;;  %v110_v55 = vld [vmem:[#allocation5 + $0x218] sm:$0xff]  ;;  %v172_v56 = vcombine.high %v407_v52, %v407_v52  ;;  %v128_v58 = vld [vmem:[#allocation5 + $0x2a8] sm:$0xff]  ;;  %v111_v61 = vld [vmem:[#allocation5 + $0x220] sm:$0xff] }
  0x40   :  { %568 = vmatpush3.bf16.msra.mxu1 %v567_v17  ;;  %v583_v59 = vpack.c.bf16 %v110_v55, %v109_v54  ;;  %v585_v60 = vpack.c.bf16 %v128_v58, %v127_v57  ;;  %v112_v62 = vld [vmem:[#allocation5 + $0x228] sm:$0xff]  ;;  %v129_v63 = vld [vmem:[#allocation5 + $0x2b0] sm:$0xff]  ;;  %v130_v0 = vld [vmem:[#allocation5 + $0x2b8] sm:$0xff] }
  0x41   :  { %570 = vmatprep.subr.bf16.mxu1 %v569_v25  ;;  %v587_v1 = vpack.c.bf16 %v112_v62, %v111_v61  ;;  %v589_v2 = vpack.c.bf16 %v130_v0, %v129_v63  ;;  %v113_v3 = vld [vmem:[#allocation5 + $0x230] sm:$0xff]  ;;  %v114_v4 = vld [vmem:[#allocation5 + $0x238] sm:$0xff]  ;;  %v131_v5 = vld [vmem:[#allocation5 + $0x2c0] sm:$0xff] }
  0x42   :  { %540 = vmatpush3.bf16.msra.mxu0 %v539_v33  ;;  %v132_v6 = vld [vmem:[#allocation5 + $0x2c8] sm:$0xff]  ;;  %v591_v7 = vpack.c.bf16 %v114_v4, %v113_v3  ;;  %v115_v9 = vld [vmem:[#allocation5 + $0x240] sm:$0xff]  ;;  %v133_v11 = vld [vmem:[#allocation5 + $0x2d0] sm:$0xff] }
  0x43   :  { %542 = vmatprep.subr.bf16.mxu0 %v541_v35  ;;  %v593_v8 = vpack.c.bf16 %v132_v6, %v131_v5  ;;  %v116_v10 = vld [vmem:[#allocation5 + $0x248] sm:$0xff]  ;;  %v134_v12 = vld [vmem:[#allocation5 + $0x2d8] sm:$0xff]  ;;  %v117_v15 = vld [vmem:[#allocation5 + $0x250] sm:$0xff] }
  0x44   :  { %572 = vmatpush3.bf16.msra.mxu1 %v571_v34  ;;  %v595_v13 = vpack.c.bf16 %v116_v10, %v115_v9  ;;  %v597_v14 = vpack.c.bf16 %v134_v12, %v133_v11  ;;  %v118_v16 = vld [vmem:[#allocation5 + $0x258] sm:$0xff]  ;;  %v135_v17 = vld [vmem:[#allocation5 + $0x2e0] sm:$0xff]  ;;  %v136_v18 = vld [vmem:[#allocation5 + $0x2e8] sm:$0xff] }
  0x45   :  { %574 = vmatprep.subr.bf16.mxu1 %v573_v40  ;;  %v599_v19 = vpack.c.bf16 %v118_v16, %v117_v15  ;;  %v601_v20 = vpack.c.bf16 %v136_v18, %v135_v17  ;;  %v119_v21 = vld [vmem:[#allocation5 + $0x260] sm:$0xff]  ;;  %v120_v22 = vld [vmem:[#allocation5 + $0x268] sm:$0xff]  ;;  %v138_v24 = vld [vmem:[#allocation5 + $0x2f8] sm:$0xff] }
  0x46   :  { %544 = vmatpush3.bf16.msra.mxu0 %v543_v44  ;;  %v603_v25 = vpack.c.bf16 %v120_v22, %v119_v21  ;;  %v121_v27 = vld [vmem:[#allocation5 + $0x270] sm:$0xff]  ;;  %v122_v28 = vld [vmem:[#allocation5 + $0x278] sm:$0xff] }
  0x47   :  { %578 = vmatprep.subr.bf16.mxu0 %v577_v46  ;;  %v607_v29 = vpack.c.bf16 %v122_v28, %v121_v27  ;;  %v406_v31 = vld [vmem:[%s762_s2] ss:$0 sm:$0xff] }
  0x48   :  { %576 = vmatpush3.bf16.msra.mxu1 %v575_v45 }
  0x49   :  { %244 = vmatmul.mubr.f32.vlgmr.msra.gmra.mrb[0].mxu0 %v155_v23  ;;  %v137_v23 = vld [vmem:[#allocation5 + $0x2f0] sm:$0xff] }
  0x4a   :  { %580 = vmatpush3.bf16.msra.mxu0 %v579_v51  ;;  %383 = vmatprep.mubr.f32.mxu0 %v172_v56  ;;  %v605_v26 = vpack.c.bf16 %v138_v24, %v137_v23 }
  0x4b   :  { %314 = vmatmul.mubr.f32.vlgmr.msra.gmra.mrb[0].mxu1 %v162_v32  ;;  %582 = vmatprep.subr.bf16.mxu0 %v581_v53 }
  0x4e   :  { %584 = vmatpush3.bf16.msra.mxu0 %v583_v59 }
  0x4f   :  { %586 = vmatprep.subr.bf16.mxu0 %v585_v60 }
  0x52   :  { %588 = vmatpush3.bf16.msra.mxu0 %v587_v1 }
  0x53   :  { %590 = vmatprep.subr.bf16.mxu0 %v589_v2 }
  0x56   :  { %592 = vmatpush3.bf16.msra.mxu0 %v591_v7 }
  0x57   :  { %594 = vmatprep.subr.bf16.mxu0 %v593_v8 }
  0x5a   :  { %596 = vmatpush3.bf16.msra.mxu0 %v595_v13 }
  0x5b   :  { %598 = vmatprep.subr.bf16.mxu0 %v597_v14 }
  0x5e   :  { %600 = vmatpush3.bf16.msra.mxu0 %v599_v19 }
  0x5f   :  { %602 = vmatprep.subr.bf16.mxu0 %v601_v20 }
  0x62   :  { %604 = vmatpush3.bf16.msra.mxu0 %v603_v25 }
  0x63   :  { %606 = vmatprep.subr.bf16.mxu0 %v605_v26 }
  0x66   :  { %608 = vmatpush3.bf16.msra.mxu0 %v607_v29 }
  0x69   :  { %384 = vmatmul.mubr.f32.vlgmr.msra.gmra.mrb[2].mxu0 %v407_v52 }
 0x11c   :  { %v440_v30 = vpop.f32.mrb[0].mxu0 }
 0x11d   :  { %v441_v32 = vpop.f32.mrb[1].mxu0 }
 0x11e   :  { %v475_v33 = vpop.f32.mrb[0].mxu1  ;;  %v442_v34 = vadd.f32 %v441_v32, %v440_v30 }
 0x11f   :  { %v476_v35 = vpop.f32.mrb[1].mxu1 }
 0x120   :  { %v477_v36 = vadd.f32 %v476_v35, %v475_v33  ;;  %v246_v37 = vadd.f32 %v442_v34, %v406_v31 }
 0x122   :  { %v316_v38 = vadd.f32 %v477_v36, %v246_v37 }
 0x13c   :  { %v510_v39 = vpop.f32.mrb[2].mxu0 }
 0x13d   :  { %v511_v40 = vpop.f32.mrb[3].mxu0 }
 0x13e   :  { %v512_v41 = vadd.f32 %v511_v40, %v510_v39 }
 0x140   :  { %v386_v42 = vadd.f32 %v512_v41, %v316_v38 }
 0x142   :  { %389 = vst [vmem:[#allocation7] sm:$0x3] %v386_v42 }
 0x143   :  { %671 = shalt.err (!%p668_p6)
}
 0x144   :  { %s672_s15 = scalar_lea.hbm %s763_s3, 32 }
 0x145   :  { %p673_p7 = scmp.ne.s32.totalorder %s763_s3, %s672_s15  ;;  %p676_p8 = scmp.lt.u32.totalorder %s672_s15, %s763_s3 }
 0x147   :  { %p678_p9 = pnand %p676_p8, %p673_p7 }
 0x149   :  { %681 = shalt.err (!%p678_p9)
}
 0x14a   :  { %399 = dma.vmem_to_hbm [thread:$0]  %s397_s12, 32, %s763_s3, [#allocation4]  }
 0x14b   :  { %686 = dma.done.wait [#allocation4], 32  }
 0x14c   :  { %687 = vsyncadd [#allocation4], 4294967264 }
 0x14d   :  { %403 = vsyncpa [#allocation3], 1 }
 0x14e   :  { %404 = vsyncpa [#allocation6], 1 }
 0x14f   :  { %405 = vsyncpa [#allocation4], 1 }

</bundles_post_ra>
